<compile_context>
chip_gen: v6e
topology: v6e:2x2x1
jax: 0.10.0
libtpu: 0.0.40
codegen_flags: <defaults>
</compile_context>

<pallas_src>
import functools

import jax
import jax.numpy as jnp
from jax.experimental import pallas as pl
from jax.experimental.pallas import tpu as pltpu


def _round_up(x, m):
    return ((x + m - 1) // m) * m


# -----------------------------------------------------------------------------
# Pallas kernel: fused  final-LayerNorm -> Linear(H,256) -> ReLU -> Linear(256,C)
# on last-token rows only.
# -----------------------------------------------------------------------------
def _head_kernel(cls_ref, g_ref, beta_ref, w1_ref, b1_ref, w2_ref, b2_ref, out_ref):
    # cls_ref: (TB, H) last-token hidden states (pre final LayerNorm), bf16.
    x = cls_ref[...].astype(jnp.float32)                              # (TB, H)

    # Fused final LayerNorm of the GPT-2 trunk (per-row).
    mu = jnp.mean(x, axis=-1, keepdims=True)
    var = jnp.mean((x - mu) ** 2, axis=-1, keepdims=True)
    h = (x - mu) * jax.lax.rsqrt(var + 1e-5) * g_ref[...] + beta_ref[...]

    # Linear(H, 256) + ReLU: bf16 MXU inputs, f32 accumulate, f32 VPU epilogue.
    z1 = jnp.dot(h.astype(w1_ref.dtype), w1_ref[...],
                 preferred_element_type=jnp.float32) + b1_ref[...]
    a1 = jnp.maximum(z1, 0.0)

    # TODO(synk): Dropout(0.3) is an inference-mode identity here; a training
    # kernel would draw a mask with pltpu.prng_seed + pltpu.stateful_bernoulli.

    # Linear(256, num_classes) — output padded to 128 lanes (sliced in wrapper).
    logits = jnp.dot(a1.astype(w2_ref.dtype), w2_ref[...],
                     preferred_element_type=jnp.float32) + b2_ref[...]
    out_ref[...] = logits.astype(out_ref.dtype)


def mlp_head(cls_pre_ln, lnf_g, lnf_b, w1, b1, w2, b2, *, batch_tile=128):
    """(B, H) last-token pre-LN hidden states -> (B, num_classes) logits."""
    B, H = cls_pre_ln.shape
    H1 = w1.shape[1]                         # 256
    num_classes = w2.shape[1]                # 7
    NP = _round_up(num_classes, 128)         # lane-dense output width

    tb = min(batch_tile, _round_up(B, 8))    # sublane-aligned batch tile
    B_pad = _round_up(B, tb)

    # Pad batch rows and the narrow output dimension (zeros are inert).
    cls_p = jnp.zeros((B_pad, H), cls_pre_ln.dtype).at[:B].set(cls_pre_ln)
    w2_p = jnp.zeros((H1, NP), w2.dtype).at[:, :num_classes].set(w2)
    b2_p = jnp.zeros((1, NP), jnp.float32).at[0, :num_classes].set(
        b2.astype(jnp.float32))

    grid = (B_pad // tb,)
    out = pl.pallas_call(
        _head_kernel,
        out_shape=jax.ShapeDtypeStruct((B_pad, NP), jnp.float32),
        grid_spec=pltpu.PrefetchScalarGridSpec(
            num_scalar_prefetch=0,
            grid=grid,
            in_specs=[
                pl.BlockSpec((tb, H), lambda i: (i, 0)),    # last-token batch tile
                pl.BlockSpec((1, H), lambda i: (0, 0)),     # ln_f gamma (resident)
                pl.BlockSpec((1, H), lambda i: (0, 0)),     # ln_f beta  (resident)
                pl.BlockSpec((H, H1), lambda i: (0, 0)),    # W1 (resident)
                pl.BlockSpec((1, H1), lambda i: (0, 0)),    # b1
                pl.BlockSpec((H1, NP), lambda i: (0, 0)),   # W2 padded (resident)
                pl.BlockSpec((1, NP), lambda i: (0, 0)),    # b2 padded
            ],
            out_specs=pl.BlockSpec((tb, NP), lambda i: (i, 0)),
        ),
        compiler_params=pltpu.CompilerParams(
            dimension_semantics=("parallel",),              # megacore-shardable
            vmem_limit_bytes=64 << 20,
        ),
    )(
        cls_p,
        lnf_g.reshape(1, -1).astype(jnp.float32),
        lnf_b.reshape(1, -1).astype(jnp.float32),
        w1,
        b1.reshape(1, -1).astype(jnp.float32),
        w2_p,
        b2_p,
    )
    return out[:B, :num_classes]


# -----------------------------------------------------------------------------
# Tiny deterministic GPT-2-style base model (plain-JAX glue; the injected
# `base_model` is external to GPT2AgeClassifier itself).
# -----------------------------------------------------------------------------
def _layer_norm(x, g, b, eps=1e-5):
    mu = jnp.mean(x, axis=-1, keepdims=True)
    var = jnp.mean((x - mu) ** 2, axis=-1, keepdims=True)
    return (x - mu) * jax.lax.rsqrt(var + eps) * g + b


def _gelu(x):
    return 0.5 * x * (1.0 + jnp.tanh(0.7978845608028654 * (x + 0.044715 * x ** 3)))


def init_base_model_params(key, vocab_size, max_seq, hidden):
    ks = jax.random.split(key, 8)
    s = 0.02
    return {
        "wte": jax.random.normal(ks[0], (vocab_size, hidden)) * s,
        "wpe": jax.random.normal(ks[1], (max_seq, hidden)) * s,
        "ln1_g": jnp.ones((hidden,)), "ln1_b": jnp.zeros((hidden,)),
        "w_qkv": jax.random.normal(ks[2], (hidden, 3 * hidden)) * s,
        "b_qkv": jnp.zeros((3 * hidden,)),
        "w_proj": jax.random.normal(ks[3], (hidden, hidden)) * s,
        "b_proj": jnp.zeros((hidden,)),
        "ln2_g": jnp.ones((hidden,)), "ln2_b": jnp.zeros((hidden,)),
        "w_fc": jax.random.normal(ks[4], (hidden, 4 * hidden)) * s,
        "b_fc": jnp.zeros((4 * hidden,)),
        "w_fc2": jax.random.normal(ks[5], (4 * hidden, hidden)) * s,
        "b_fc2": jnp.zeros((hidden,)),
        "lnf_g": jnp.ones((hidden,)), "lnf_b": jnp.zeros((hidden,)),
    }


def base_model_trunk(p, input_ids, attention_mask):
    """Hidden states BEFORE the final ln_f (ln_f is fused into the Pallas head)."""
    B, S = input_ids.shape
    H = p["wte"].shape[1]
    x = p["wte"][input_ids] + p["wpe"][jnp.arange(S)][None, :, :]        # (B, S, H)

    # Single-head causal self-attention with padding mask.
    h = _layer_norm(x, p["ln1_g"], p["ln1_b"])
    qkv = h @ p["w_qkv"] + p["b_qkv"]
    q, k, v = jnp.split(qkv, 3, axis=-1)
    scores = jnp.einsum("bqh,bkh->bqk", q, k) / jnp.sqrt(jnp.float32(H))
    causal = jnp.tril(jnp.ones((S, S), dtype=bool))[None, :, :]
    pad = attention_mask[:, None, :].astype(bool)
    scores = jnp.where(causal & pad, scores, -1e9)
    attn = jax.nn.softmax(scores, axis=-1)
    ctx = jnp.einsum("bqk,bkh->bqh", attn, v)
    x = x + ctx @ p["w_proj"] + p["b_proj"]

    # Feed-forward block.
    h = _layer_norm(x, p["ln2_g"], p["ln2_b"])
    ff = _gelu(h @ p["w_fc"] + p["b_fc"]) @ p["w_fc2"] + p["b_fc2"]
    return x + ff


# -----------------------------------------------------------------------------
# Full GPT2AgeClassifier forward.
# -----------------------------------------------------------------------------
def gpt2_age_classifier_forward(base_params, head_params, input_ids, attention_mask):
    x_pre_ln = base_model_trunk(base_params, input_ids, attention_mask)  # (B, S, H)
    # hidden_states[:, -1, :] — like the PyTorch module this takes the LAST
    # position (a pad token for right-padded batches). Only this (B, H) row
    # reaches the kernel; ln_f is applied inside the kernel.
    cls_pre = x_pre_ln[:, -1, :].astype(jnp.bfloat16)
    w1, b1, w2, b2 = head_params
    return mlp_head(cls_pre, base_params["lnf_g"], base_params["lnf_b"],
                    w1, b1, w2, b2)


if __name__ == "__main__":
    B, S, H, V = 2, 8, 32, 50
    HIDDEN_MLP, NUM_CLASSES = 256, 7

    key = jax.random.PRNGKey(0)
    k_base, k_ids, k_w1, k_w2 = jax.random.split(key, 4)

    base_params = init_base_model_params(k_base, V, S, H)

    # nn.Linear(H, 256) / nn.Linear(256, 7), stored as (in, out); weights kept in
    # bf16 (native storage dtype), biases in f32.
    w1 = (jax.random.normal(k_w1, (H, HIDDEN_MLP)) * 0.02).astype(jnp.bfloat16)
    b1 = jnp.zeros((HIDDEN_MLP,), jnp.float32)
    w2 = (jax.random.normal(k_w2, (HIDDEN_MLP, NUM_CLASSES)) * 0.02).astype(jnp.bfloat16)
    b2 = jnp.zeros((NUM_CLASSES,), jnp.float32)
    head_params = (w1, b1, w2, b2)

    input_ids = jax.random.randint(k_ids, (B, S), 0, V)
    attention_mask = jnp.ones((B, S), dtype=jnp.int32)

    fwd = jax.jit(functools.partial(gpt2_age_classifier_forward,
                                    base_params, head_params))
    logits = jax.block_until_ready(fwd(input_ids, attention_mask))

    # Pure-JAX reference of the module's own compute (mirrors the kernel's bf16
    # storage so the comparison is tight): ln_f(last token) -> MLP head.
    x_pre = base_model_trunk(base_params, input_ids, attention_mask)
    cls_in = x_pre[:, -1, :].astype(jnp.bfloat16).astype(jnp.float32)
    cls = _layer_norm(cls_in, base_params["lnf_g"], base_params["lnf_b"])
    z1 = jnp.dot(cls.astype(jnp.bfloat16), w1, preferred_element_type=jnp.float32) + b1
    a1 = jnp.maximum(z1, 0.0)
    ref = jnp.dot(a1.astype(jnp.bfloat16), w2, preferred_element_type=jnp.float32) + b2

    assert logits.shape == (B, NUM_CLASSES)
    assert jnp.allclose(logits, ref, atol=2e-3, rtol=1e-2), "mismatch vs reference"

    print("KERNEL_OK")
</pallas_src>

<mosaic_0001>
module attributes {stable_mosaic.version = 11 : i64} {
  func.func @_head_kernel(%arg0: i32, %arg1: memref<8x32xbf16, #tpu.memory_space<vmem>>, %arg2: memref<1x32xf32, #tpu.memory_space<vmem>>, %arg3: memref<1x32xf32, #tpu.memory_space<vmem>>, %arg4: memref<32x256xbf16, #tpu.memory_space<vmem>>, %arg5: memref<1x256xf32, #tpu.memory_space<vmem>>, %arg6: memref<256x128xbf16, #tpu.memory_space<vmem>>, %arg7: memref<1x128xf32, #tpu.memory_space<vmem>>, %arg8: memref<8x128xf32, #tpu.memory_space<vmem>>) attributes {dimension_semantics = [#tpu.dimension_semantics<parallel>], iteration_bounds = array<i64: 1>, scalar_prefetch = 0 : i64, scratch_operands = 0 : i64, tpu.core_type = #tpu.core_type<tc>, window_params = [{transform_indices = @transform_0, window_bounds = array<i64: 8, 32>}, {pipeline_mode = #tpu.pipeline_mode<synchronous>, transform_indices = @transform_1, window_bounds = array<i64: 1, 32>}, {pipeline_mode = #tpu.pipeline_mode<synchronous>, transform_indices = @transform_2, window_bounds = array<i64: 1, 32>}, {pipeline_mode = #tpu.pipeline_mode<synchronous>, transform_indices = @transform_3, window_bounds = array<i64: 32, 256>}, {pipeline_mode = #tpu.pipeline_mode<synchronous>, transform_indices = @transform_4, window_bounds = array<i64: 1, 256>}, {pipeline_mode = #tpu.pipeline_mode<synchronous>, transform_indices = @transform_5, window_bounds = array<i64: 256, 128>}, {pipeline_mode = #tpu.pipeline_mode<synchronous>, transform_indices = @transform_6, window_bounds = array<i64: 1, 128>}, {transform_indices = @transform_7, window_bounds = array<i64: 8, 128>}]} {
    %c0 = arith.constant 0 : index
    %c0_0 = arith.constant 0 : index
    %0 = vector.load %arg1[%c0, %c0_0] : memref<8x32xbf16, #tpu.memory_space<vmem>>, vector<8x32xbf16>
    %1 = arith.extf %0 : vector<8x32xbf16> to vector<8x32xf32>
    %cst = arith.constant dense<0.000000e+00> : vector<8xf32>
    %2 = vector.multi_reduction <add>, %1, %cst [1] : vector<8x32xf32> to vector<8xf32>
    %3 = vector.shape_cast %2 : vector<8xf32> to vector<8x1xf32>
    %cst_1 = arith.constant 3.200000e+01 : f32
    %4 = vector.broadcast %cst_1 : f32 to vector<8x1xf32>
    %5 = arith.divf %3, %4 : vector<8x1xf32>
    %6 = vector.broadcast %5 : vector<8x1xf32> to vector<8x32xf32>
    %7 = arith.subf %1, %6 : vector<8x32xf32>
    %8 = arith.mulf %7, %7 : vector<8x32xf32>
    %cst_2 = arith.constant dense<0.000000e+00> : vector<8xf32>
    %9 = vector.multi_reduction <add>, %8, %cst_2 [1] : vector<8x32xf32> to vector<8xf32>
    %10 = vector.shape_cast %9 : vector<8xf32> to vector<8x1xf32>
    %cst_3 = arith.constant 3.200000e+01 : f32
    %11 = vector.broadcast %cst_3 : f32 to vector<8x1xf32>
    %12 = arith.divf %10, %11 : vector<8x1xf32>
    %13 = vector.broadcast %5 : vector<8x1xf32> to vector<8x32xf32>
    %14 = arith.subf %1, %13 : vector<8x32xf32>
    %cst_4 = arith.constant 9.99999974E-6 : f32
    %15 = vector.broadcast %cst_4 : f32 to vector<8x1xf32>
    %16 = arith.addf %12, %15 : vector<8x1xf32>
    %17 = math.rsqrt %16 : vector<8x1xf32>
    %18 = vector.broadcast %17 : vector<8x1xf32> to vector<8x32xf32>
    %19 = arith.mulf %14, %18 : vector<8x32xf32>
    %c0_5 = arith.constant 0 : index
    %c0_6 = arith.constant 0 : index
    %20 = vector.load %arg2[%c0_5, %c0_6] : memref<1x32xf32, #tpu.memory_space<vmem>>, vector<1x32xf32>
    %21 = vector.broadcast %20 : vector<1x32xf32> to vector<8x32xf32>
    %22 = arith.mulf %19, %21 : vector<8x32xf32>
    %c0_7 = arith.constant 0 : index
    %c0_8 = arith.constant 0 : index
    %23 = vector.load %arg3[%c0_7, %c0_8] : memref<1x32xf32, #tpu.memory_space<vmem>>, vector<1x32xf32>
    %24 = vector.broadcast %23 : vector<1x32xf32> to vector<8x32xf32>
    %25 = arith.addf %22, %24 : vector<8x32xf32>
    %26 = arith.truncf %25 : vector<8x32xf32> to vector<8x32xbf16>
    %c0_9 = arith.constant 0 : index
    %c0_10 = arith.constant 0 : index
    %27 = vector.load %arg4[%c0_9, %c0_10] : memref<32x256xbf16, #tpu.memory_space<vmem>>, vector<32x256xbf16>
    %cst_11 = arith.constant dense<0.000000e+00> : vector<8x256xf32>
    %28 = tpu.matmul %26, %27, %cst_11 {dimension_numbers = #tpu.dot_dimension_numbers<[1], [0], [0], [1], [0, 0, 1, 1], [], []>} : vector<8x32xbf16>, vector<32x256xbf16>, vector<8x256xf32> -> vector<8x256xf32>
    %c0_12 = arith.constant 0 : index
    %c0_13 = arith.constant 0 : index
    %29 = vector.load %arg5[%c0_12, %c0_13] : memref<1x256xf32, #tpu.memory_space<vmem>>, vector<1x256xf32>
    %30 = vector.broadcast %29 : vector<1x256xf32> to vector<8x256xf32>
    %31 = arith.addf %28, %30 : vector<8x256xf32>
    %cst_14 = arith.constant 0.000000e+00 : f32
    %32 = vector.broadcast %cst_14 : f32 to vector<8x256xf32>
    %33 = arith.maximumf %31, %32 : vector<8x256xf32>
    %34 = arith.truncf %33 : vector<8x256xf32> to vector<8x256xbf16>
    %c0_15 = arith.constant 0 : index
    %c0_16 = arith.constant 0 : index
    %35 = vector.load %arg6[%c0_15, %c0_16] : memref<256x128xbf16, #tpu.memory_space<vmem>>, vector<256x128xbf16>
    %cst_17 = arith.constant dense<0.000000e+00> : vector<8x128xf32>
    %36 = tpu.matmul %34, %35, %cst_17 {dimension_numbers = #tpu.dot_dimension_numbers<[1], [0], [0], [1], [0, 0, 1, 1], [], []>} : vector<8x256xbf16>, vector<256x128xbf16>, vector<8x128xf32> -> vector<8x128xf32>
    %c0_18 = arith.constant 0 : index
    %c0_19 = arith.constant 0 : index
    %37 = vector.load %arg7[%c0_18, %c0_19] : memref<1x128xf32, #tpu.memory_space<vmem>>, vector<1x128xf32>
    %38 = vector.broadcast %37 : vector<1x128xf32> to vector<8x128xf32>
    %39 = arith.addf %36, %38 : vector<8x128xf32>
    %c0_20 = arith.constant 0 : index
    %c0_21 = arith.constant 0 : index
    %40 = vector.load %arg8[%c0_20, %c0_21] : memref<8x128xf32, #tpu.memory_space<vmem>>, vector<8x128xf32>
    tpu.vector_store %arg8[%c0_20, %c0_21], %39 {strides = array<i32>} : memref<8x128xf32, #tpu.memory_space<vmem>>, vector<8x128xf32>,
    return
  }
  func.func @transform_0(%arg0: i32) -> (i32, i32) {
    %c0_i32 = arith.constant 0 : i32
    %c0_i32_0 = arith.constant 0 : i32
    return %arg0, %c0_i32 : i32, i32
  }
  func.func @transform_1(%arg0: i32) -> (i32, i32) {
    %c0_i32 = arith.constant 0 : i32
    %c0_i32_0 = arith.constant 0 : i32
    %c0_i32_1 = arith.constant 0 : i32
    return %c0_i32, %c0_i32_0 : i32, i32
  }
  func.func @transform_2(%arg0: i32) -> (i32, i32) {
    %c0_i32 = arith.constant 0 : i32
    %c0_i32_0 = arith.constant 0 : i32
    %c0_i32_1 = arith.constant 0 : i32
    return %c0_i32, %c0_i32_0 : i32, i32
  }
  func.func @transform_3(%arg0: i32) -> (i32, i32) {
    %c0_i32 = arith.constant 0 : i32
    %c0_i32_0 = arith.constant 0 : i32
    %c0_i32_1 = arith.constant 0 : i32
    return %c0_i32, %c0_i32_0 : i32, i32
  }
  func.func @transform_4(%arg0: i32) -> (i32, i32) {
    %c0_i32 = arith.constant 0 : i32
    %c0_i32_0 = arith.constant 0 : i32
    %c0_i32_1 = arith.constant 0 : i32
    return %c0_i32, %c0_i32_0 : i32, i32
  }
  func.func @transform_5(%arg0: i32) -> (i32, i32) {
    %c0_i32 = arith.constant 0 : i32
    %c0_i32_0 = arith.constant 0 : i32
    %c0_i32_1 = arith.constant 0 : i32
    return %c0_i32, %c0_i32_0 : i32, i32
  }
  func.func @transform_6(%arg0: i32) -> (i32, i32) {
    %c0_i32 = arith.constant 0 : i32
    %c0_i32_0 = arith.constant 0 : i32
    %c0_i32_1 = arith.constant 0 : i32
    return %c0_i32, %c0_i32_0 : i32, i32
  }
  func.func @transform_7(%arg0: i32) -> (i32, i32) {
    %c0_i32 = arith.constant 0 : i32
    %c0_i32_0 = arith.constant 0 : i32
    return %arg0, %c0_i32 : i32, i32
  }
}

</mosaic_0001>

<bundles_post_ra>
// kernel: gpt2_age_classifier_forward.1
= control target key start
LH: loop header
LB: loop body
LE: loop exit
PB: predicated region body
PF: predicated region fallthrough
CT: control target
= control target key end

     0   :  { %vm29_vm0 = vcmask 261120   ;;  %v396_v9 = vmov 0   ;;  %v67_v39 = vlaneseq  ;;  %s518_s0 = inlined_call_operand.vmem [shape: bf16[8,32], index: 0, kind: input, shape index: {}]   ;;  %s519_s3 = inlined_call_operand.vmem [shape: bf16[32,256], index: 3, kind: input, shape index: {}]   ;;  %s520_s5 = inlined_call_operand.vmem [shape: bf16[256,128], index: 5, kind: input, shape index: {}]   ;;  %s521_s1 = inlined_call_operand.vmem [shape: f32[1,32], index: 1, kind: input, shape index: {}]   ;;  %s522_s2 = inlined_call_operand.vmem [shape: f32[1,32], index: 2, kind: input, shape index: {}]   ;;  %s523_s4 = inlined_call_operand.vmem [shape: f32[1,256], index: 4, kind: input, shape index: {}]   ;;  %s524_s6 = inlined_call_operand.vmem [shape: f32[1,128], index: 6, kind: input, shape index: {}]   ;;  %s525_s7 = inlined_call_operand.vmem [shape: f32[8,128], index: 7, kind: output, shape index: {}]  }
   0x1   :  { %v27_v0 = vld [vmem:[%s518_s0] sm:$0xf]  ;;  %v372_v8 = vld [vmem:[%s519_s3 + $0x14] ss:$8 sps:$4 sm:$0xff]   ;;  %132 = vmatprep.mubr.bf16.mxu0 %v396_v9  ;;  %v374_v10 = vld [vmem:[%s519_s3 + $0x10] ss:$8 sps:$4 sm:$0xff]  }
   0x2   :  { %v28_v1 = vunpack.c.l.bf16 %v27_v0  ;;  %112 = vmatprep.subr.bf16.mxu0 %v372_v8  ;;  %v375_v11 = vld [vmem:[%s519_s3 + $0x4] ss:$8 sps:$4 sm:$0xff]   ;;  %v377_v12 = vld [vmem:[%s519_s3] ss:$8 sps:$4 sm:$0xff]   ;;  %v378_v13 = vld [vmem:[%s520_s5 + $0x78] sm:$0xff]   ;;  %v68_v40 = vshrl.u32 %v67_v39, 7 }
   0x3   :  { %113 = vmatpush1.bf16.msra.mxu0 %v374_v10  ;;  %v379_v14 = vld [vmem:[%s520_s5 + $0x38] sm:$0xff]   ;;  %349 = vmatprep.subr.bf16.mxu1 %v378_v13  ;;  %v380_v15 = vld [vmem:[%s520_s5 + $0x70] sm:$0xff]   ;;  %v382_v17 = vld [vmem:[%s520_s5 + $0x68] sm:$0xff]  }
   0x4   :  { %v30_v2 = vsel %vm29_vm0, %v28_v1, 0.0  ;;  %114 = vmatprep.subr.bf16.mxu0 %v375_v11  ;;  %350 = vmatpush3.bf16.msra.mxu1 %v379_v14  ;;  %v381_v16 = vld [vmem:[%s520_s5 + $0x30] sm:$0xff]   ;;  %v383_v18 = vld [vmem:[%s520_s5 + $0x28] sm:$0xff]   ;;  %v384_v19 = vld [vmem:[%s520_s5 + $0x60] sm:$0xff]   ;;  %v69_v41 = vsub.s32 0, %v68_v40  ;;  %v73_v43 = vsub.s32 1, %v68_v40 }
   0x5   :  { %31 = vadd.xlane.f32.xlu0 %v30_v2  ;;  %351 = vmatprep.subr.bf16.mxu1 %v380_v15  ;;  %v385_v20 = vld [vmem:[%s520_s5 + $0x20] sm:$0xff]   ;;  %v386_v21 = vld [vmem:[%s520_s5 + $0x58] sm:$0xff]   ;;  %v388_v23 = vld [vmem:[%s520_s5 + $0x50] sm:$0xff]  }
   0x6   :  { %v387_v22 = vld [vmem:[%s520_s5 + $0x18] sm:$0xff]   ;;  %v389_v24 = vld [vmem:[%s520_s5 + $0x10] sm:$0xff]   ;;  %v325_v29 = vld [vmem:[%s521_s1] ss:$0 sm:$0xff] }
   0x7   :  { %115 = vmatpush1.bf16.msra.mxu0 %v377_v12  ;;  %v326_v31 = vld [vmem:[%s522_s2] ss:$0 sm:$0xff]  ;;  %v390_v35 = vld [vmem:[%s520_s5 + $0x48] sm:$0xff]  }
   0x8   :  { %352 = vmatpush3.bf16.msra.mxu1 %v381_v16  ;;  %v391_v36 = vld [vmem:[%s520_s5 + $0x8] sm:$0xff]   ;;  %v392_v37 = vld [vmem:[%s520_s5 + $0x40] sm:$0xff]  }
   0x9   :  { %353 = vmatprep.subr.bf16.mxu1 %v382_v17  ;;  %v393_v38 = vld [vmem:[%s520_s5] sm:$0xff]  }
   0xa   :  { %v65_v42 = vld [vmem:[%s523_s4] sm:$0x3] }
   0xb   :  { %v70_v44 = vrot.slane %v65_v42, %v69_v41  ;;  %v74_v45 = vrot.slane %v65_v42, %v73_v43  ;;  %v332_v57 = vld [vmem:[%s524_s6] ss:$0 sm:$0xff] }
   0xc   :  { %354 = vmatpush3.bf16.msra.mxu1 %v383_v18 }
   0xd   :  { %355 = vmatprep.subr.bf16.mxu1 %v384_v19 }
  0x10   :  { %356 = vmatpush3.bf16.msra.mxu1 %v385_v20 }
  0x11   :  { %357 = vmatprep.subr.bf16.mxu1 %v386_v21 }
  0x14   :  { %358 = vmatpush3.bf16.msra.mxu1 %v387_v22 }
  0x15   :  { %359 = vmatprep.subr.bf16.mxu1 %v388_v23 }
  0x18   :  { %360 = vmatpush3.bf16.msra.mxu1 %v389_v24 }
  0x19   :  { %361 = vmatprep.subr.bf16.mxu1 %v390_v35 }
  0x1c   :  { %362 = vmatpush3.bf16.msra.mxu1 %v391_v36 }
  0x1d   :  { %363 = vmatprep.subr.bf16.mxu1 %v392_v37 }
  0x20   :  { %364 = vmatpush3.bf16.msra.mxu1 %v393_v38 }
  0x8e   :  { %v32_v3 = vpop.xlane.xlu0 %31 }
  0x8f   :  { %v34_v4 = vmul.f32 0.03125, %v32_v3 }
  0x91   :  { %v35_v5 = vsub.f32 %v28_v1, %v34_v4 }
  0x93   :  { %v36_v6 = vmul.f32 %v35_v5, %v35_v5 }
  0x95   :  { %v37_v7 = vsel %vm29_vm0, %v36_v6, 0.0 }
  0x96   :  { %38 = vadd.xlane.f32.xlu0 %v37_v7 }
 0x11f   :  { %v39_v25 = vpop.xlane.xlu0 %38 }
 0x120   :  { %v40_v26 = vmul.f32 0.03125, %v39_v25 }
 0x122   :  { %v41_v27 = vadd.f32 1e-05, %v40_v26 }
 0x124   :  { %394 = vrsqrt.f32 %v41_v27 }
 0x131   :  { %v395_v28 = vpop.eup %394 }
 0x132   :  { %v43_v30 = vmul.f32 %v395_v28, %v35_v5 }
 0x134   :  { %v51_v32 = vmul.f32 %v325_v29, %v43_v30 }
 0x136   :  { %v59_v33 = vadd.f32 %v326_v31, %v51_v32 }
 0x138   :  { %v60_v34 = vpack.c.bf16 %v59_v33, %v59_v33 }
 0x13a   :  { %331 = vmatmul.mubr.msk.bf16.vlgmr.msra.gmra.mxu0 %vm29_vm0, %v60_v34 }
 0x1fa   :  { %v134_v46 = vpop.f32.mrf.mxu0 }
 0x1fb   :  { %v135_v47 = vadd.f32 %v134_v46, %v70_v44 }
 0x1fc   :  { %v136_v48 = vpop.f32.mrf.mxu0 }
 0x1fd   :  { %v137_v49 = vadd.f32 %v136_v48, %v74_v45  ;;  %v141_v50 = vmax.f32 %v135_v47, 0.0 }
 0x1fe   :  { %v138_v51 = vpop.f32.mrf.mxu0 }
 0x1ff   :  { %v142_v52 = vmax.f32 %v137_v49, 0.0  ;;  %v143_v55 = vpack.c.bf16 %v141_v50, %v141_v50 }
 0x200   :  { %v139_v53 = vpop.f32.mrf.mxu0 }
 0x201   :  { %v144_v54 = vpack.c.bf16 %v142_v52, %v142_v52 }
 0x203   :  { %312 = vmatprep.mubr.bf16.mxu1 %v144_v54 }
 0x204   :  { %313 = vmatmul.mubr.bf16.vlgmr.msra.gmra.mxu1 %v143_v55 }
 0x2c4   :  { %v365_v56 = vpop.f32.mrf.mxu1 }
 0x2c6   :  { %v366_v58 = vpop.f32.mrf.mxu1 }
 0x2c7   :  { %v367_v59 = vadd.f32 %v366_v58, %v365_v56 }
 0x2c8   :  { %v368_v60 = vpop.f32.mrf.mxu1 }
 0x2c9   :  { %v315_v61 = vadd.f32 %v367_v59, %v332_v57 }
 0x2ca   :  { %v369_v62 = vpop.f32.mrf.mxu1 }
 0x2cb   :  { %320 = vst [vmem:[%s525_s7] sm:$0xff] %v315_v61 }

</bundles_post_ra>
